<compile_context>
chip_gen: v7x
topology: tpu7x:2x2x1
jax: 0.10.0
libtpu: 0.0.40
codegen_flags: <defaults>
</compile_context>

<pallas_src>
import functools
import math

import jax
import jax.numpy as jnp
from jax.experimental import pallas as pl
from jax.experimental.pallas import tpu as pltpu


_CHUNK_BYTES = 2 * 1024 * 1024   # per-DMA chunk for the materialized-copy path
_N_OUTSTANDING = 4               # HBM->HBM DMAs kept in flight concurrently


def _make_hbm_copy_kernel(chunk, n_full, rem, n_out):
    """Build an HBM->HBM identity-copy kernel.

    `chunk` elements per DMA, `n_full` full chunks, `rem` ragged-tail elements,
    `n_out` copies kept in flight (all static Python ints).  No VMEM staging and
    no vector loads/stores: the TensorCore only issues DMA descriptors.
    """

    def kernel(x_hbm, o_hbm, sems):
        def chunk_copy(i, slot):
            return pltpu.make_async_copy(
                x_hbm.at[:, pl.ds(i * chunk, chunk)],
                o_hbm.at[:, pl.ds(i * chunk, chunk)],
                sems.at[slot],
            )

        if rem:
            # Ragged tail: one static-shaped DMA on a dedicated semaphore slot,
            # issued first so it overlaps the main chunk loop.
            tail = pltpu.make_async_copy(
                x_hbm.at[:, pl.ds(n_full * chunk, rem)],
                o_hbm.at[:, pl.ds(n_full * chunk, rem)],
                sems.at[n_out],
            )
            tail.start()

        if n_full:
            prime = min(n_out, n_full)

            # Prime: put up to n_out copies in flight.
            @pl.loop(0, prime)
            def _(i):
                chunk_copy(i, i % n_out).start()

            # Steady state: wait for the oldest outstanding copy, start the next.
            if n_full > prime:
                @pl.loop(prime, n_full)
                def _(i):
                    chunk_copy(i - n_out, i % n_out).wait()
                    chunk_copy(i, i % n_out).start()

            # Drain the last `prime` outstanding copies.
            @pl.loop(n_full - prime, n_full)
            def _(i):
                chunk_copy(i, i % n_out).wait()

        if rem:
            tail.wait()

    return kernel


def base_model_forward(x):
    """Forward of the abstract BaseModel: identity.

    The fastest identity is no kernel at all — the result already lives in the
    input buffer, so we return it directly (zero HBM traffic, zero dispatch).
    """
    return x


@functools.partial(jax.jit, static_argnames=("chunk_bytes", "n_outstanding"))
def base_model_forward_copy(x, *, chunk_bytes=_CHUNK_BYTES,
                            n_outstanding=_N_OUTSTANDING):
    """Materialized identity copy (fresh output buffer) as a Pallas TPU kernel.

    Pure HBM->HBM chunked DMA with multiple outstanding copies; works for any
    shape/dtype because no VMEM tile (and hence no (8,128) constraint) is
    involved.
    """
    shape, dtype = x.shape, x.dtype
    total = math.prod(shape)
    if total == 0:
        return x

    itemsize = jnp.dtype(dtype).itemsize
    chunk = max(1, min(chunk_bytes // itemsize, total))
    n_full, rem = divmod(total, chunk)          # n_full >= 1 since chunk <= total
    n_out = max(1, min(n_outstanding, n_full))

    x2d = x.reshape(1, total)                   # free metadata reshape (contiguous)

    y2d = pl.pallas_call(
        _make_hbm_copy_kernel(chunk, n_full, rem, n_out),
        out_shape=jax.ShapeDtypeStruct((1, total), dtype),
        in_specs=[pl.BlockSpec(memory_space=pl.ANY)],   # raw HBM ref, no auto-DMA
        out_specs=pl.BlockSpec(memory_space=pl.ANY),    # raw HBM ref, written by DMA
        scratch_shapes=[pltpu.SemaphoreType.DMA((n_out + 1,))],
        cost_estimate=pl.CostEstimate(
            flops=0, transcendentals=0, bytes_accessed=2 * total * itemsize),
    )(x2d)
    return y2d.reshape(shape)


class BaseModelJAX:
    """Mirror of the PyTorch BaseModel: no params, abstract build/forward."""

    def __init__(self):
        self.model = None
        self.params = {}  # BaseModel.__init__ registers no parameters.
        self._copy = base_model_forward_copy

    def build_model(self):
        raise NotImplementedError

    def forward(self, x, materialize=False):
        # Identity forward.  Default: short-circuit (no kernel — the output
        # bytes already exist in x's buffer).  materialize=True produces a
        # fresh HBM buffer via the Pallas HBM->HBM DMA copy kernel.
        if not materialize:
            return base_model_forward(x)
        return self._copy(x)

    def summary(self, show_structure=True):
        n_params = sum(int(jnp.size(p))
                       for p in jax.tree_util.tree_leaves(self.params))
        print("Trainable parameters:", n_params)
        if show_structure:
            print(self.__class__.__name__ + "()")


if __name__ == "__main__":
    key = jax.random.PRNGKey(0)
    # Small NCHW input consistent with a conv-style base model.
    x = jax.random.normal(key, (2, 4, 16, 16), dtype=jnp.float32)

    model = BaseModelJAX()
    model.summary(show_structure=False)

    # Fast path (the actual forward): identity is a no-op — zero HBM traffic.
    y_fast = model.forward(x)
    assert y_fast is x

    # Kernel path: materialized copy via the HBM->HBM DMA Pallas kernel.
    y = jax.block_until_ready(model.forward(x, materialize=True))
    assert y.shape == x.shape and y.dtype == x.dtype
    assert bool(jnp.array_equal(y, x))

    # Multi-chunk + ragged-tail path: a tiny chunk size forces several in-flight
    # DMAs plus a remainder copy.
    x2 = jax.random.normal(jax.random.PRNGKey(1), (3, 4, 8, 9), dtype=jnp.float32)
    y2 = jax.block_until_ready(base_model_forward_copy(x2, chunk_bytes=512))
    assert bool(jnp.array_equal(y2, x2))

    # Sub-32-bit dtype: the DMA path is layout/dtype agnostic (no VMEM tiling).
    x3 = jax.random.normal(jax.random.PRNGKey(2), (2, 4, 16, 16),
                           dtype=jnp.float32).astype(jnp.bfloat16)
    y3 = jax.block_until_ready(base_model_forward_copy(x3, chunk_bytes=1024))
    assert bool(jnp.array_equal(y3, x3))

    print("KERNEL_OK")
</pallas_src>

<mosaic_0001>
module attributes {stable_mosaic.version = 11 : i64} {
  func.func @kernel(%arg0: memref<1x2048xf32, #tpu.memory_space<any>>, %arg1: memref<1x2048xf32, #tpu.memory_space<any>>, %arg2: memref<2x!tpu.dma_semaphore, #tpu.memory_space<semaphore_mem>>) attributes {dimension_semantics = [], scalar_prefetch = 0 : i64, scratch_operands = 1 : i64, tpu.core_type = #tpu.core_type<tc>} {
    %c0_i32 = arith.constant 0 : i32
    %c1_i32 = arith.constant 1 : i32
    %0 = arith.muli %c0_i32, %c1_i32 : i32
    %c0_i32_0 = arith.constant 0 : i32
    %1 = arith.addi %c0_i32_0, %0 : i32
    %c1_i32_1 = arith.constant 1 : i32
    %c0_i32_2 = arith.constant 0 : i32
    %2 = arith.cmpi eq, %c1_i32_1, %c0_i32_2 : i32
    %c1_i32_3 = arith.constant 1 : i32
    %3 = arith.select %2, %c1_i32_3, %c1_i32_1 : i32
    %4 = arith.remsi %1, %3 : i32
    %c0_i32_4 = arith.constant 0 : i32
    %5 = arith.cmpi ne, %4, %c0_i32_4 : i32
    %c0_i32_5 = arith.constant 0 : i32
    %6 = arith.cmpi slt, %4, %c0_i32_5 : i32
    %c0_i32_6 = arith.constant 0 : i32
    %7 = arith.cmpi slt, %3, %c0_i32_6 : i32
    %8 = arith.xori %6, %7 : i1
    %9 = arith.andi %8, %5 : i1
    %10 = arith.addi %4, %3 : i32
    %11 = arith.select %9, %10, %4 : i32
    %c2048_i32 = arith.constant 2048 : i32
    %12 = arith.muli %1, %c2048_i32 : i32
    %c2048_i32_7 = arith.constant 2048 : i32
    %13 = arith.muli %1, %c2048_i32_7 : i32
    %c0_i32_8 = arith.constant 0 : i32
    %14 = tpu.memref_slice %arg0[%c0_i32_8, %12] : memref<1x2048xf32, #tpu.memory_space<any>> -> memref<1x2048xf32, #tpu.memory_space<any>>
    %c0_i32_9 = arith.constant 0 : i32
    %15 = tpu.memref_slice %arg1[%c0_i32_9, %13] : memref<1x2048xf32, #tpu.memory_space<any>> -> memref<1x2048xf32, #tpu.memory_space<any>>
    %16 = tpu.memref_slice %arg2[%11] : memref<2x!tpu.dma_semaphore, #tpu.memory_space<semaphore_mem>> -> memref<1x!tpu.dma_semaphore, #tpu.memory_space<semaphore_mem>>
    %17 = tpu.memref_squeeze %16 : memref<1x!tpu.dma_semaphore, #tpu.memory_space<semaphore_mem>> -> memref<!tpu.dma_semaphore, #tpu.memory_space<semaphore_mem>>
    tpu.enqueue_dma source(%14 : memref<1x2048xf32, #tpu.memory_space<any>>) target(%15 : memref<1x2048xf32, #tpu.memory_space<any>>) target_semaphore(%17 : memref<!tpu.dma_semaphore, #tpu.memory_space<semaphore_mem>>)
    %c1_i32_10 = arith.constant 1 : i32
    %c0_i32_11 = arith.constant 0 : i32
    %c1_i32_12 = arith.constant 1 : i32
    %18 = arith.muli %c0_i32_11, %c1_i32_12 : i32
    %c0_i32_13 = arith.constant 0 : i32
    %19 = arith.addi %c0_i32_13, %18 : i32
    %c1_i32_14 = arith.constant 1 : i32
    %c0_i32_15 = arith.constant 0 : i32
    %20 = arith.cmpi eq, %c1_i32_14, %c0_i32_15 : i32
    %c1_i32_16 = arith.constant 1 : i32
    %21 = arith.select %20, %c1_i32_16, %c1_i32_14 : i32
    %22 = arith.remsi %19, %21 : i32
    %c0_i32_17 = arith.constant 0 : i32
    %23 = arith.cmpi ne, %22, %c0_i32_17 : i32
    %c0_i32_18 = arith.constant 0 : i32
    %24 = arith.cmpi slt, %22, %c0_i32_18 : i32
    %c0_i32_19 = arith.constant 0 : i32
    %25 = arith.cmpi slt, %21, %c0_i32_19 : i32
    %26 = arith.xori %24, %25 : i1
    %27 = arith.andi %26, %23 : i1
    %28 = arith.addi %22, %21 : i32
    %29 = arith.select %27, %28, %22 : i32
    %c2048_i32_20 = arith.constant 2048 : i32
    %30 = arith.muli %19, %c2048_i32_20 : i32
    %c2048_i32_21 = arith.constant 2048 : i32
    %31 = arith.muli %19, %c2048_i32_21 : i32
    %c0_i32_22 = arith.constant 0 : i32
    %32 = tpu.memref_slice %arg0[%c0_i32_22, %30] : memref<1x2048xf32, #tpu.memory_space<any>> -> memref<1x2048xf32, #tpu.memory_space<any>>
    %c0_i32_23 = arith.constant 0 : i32
    %33 = tpu.memref_slice %arg1[%c0_i32_23, %31] : memref<1x2048xf32, #tpu.memory_space<any>> -> memref<1x2048xf32, #tpu.memory_space<any>>
    %34 = tpu.memref_slice %arg2[%29] : memref<2x!tpu.dma_semaphore, #tpu.memory_space<semaphore_mem>> -> memref<1x!tpu.dma_semaphore, #tpu.memory_space<semaphore_mem>>
    %35 = tpu.memref_squeeze %34 : memref<1x!tpu.dma_semaphore, #tpu.memory_space<semaphore_mem>> -> memref<!tpu.dma_semaphore, #tpu.memory_space<semaphore_mem>>
    tpu.wait_dma2 semaphore(%35 : memref<!tpu.dma_semaphore, #tpu.memory_space<semaphore_mem>>) src(%32 : memref<1x2048xf32, #tpu.memory_space<any>>) dst(%33 : memref<1x2048xf32, #tpu.memory_space<any>>)
    %c1_i32_24 = arith.constant 1 : i32
    return
  }
}

</mosaic_0001>

<bundles_post_ra>
// kernel: base_model_forward_copy.1
= control target key start
LH: loop header
LB: loop body
LE: loop exit
PB: predicated region body
PF: predicated region fallthrough
CT: control target
= control target key end

     0   :  { %s100_s0 = inlined_call_operand.vmem [shape: f32[1,2048], index: 0, kind: input, shape index: {}]   ;;  %s101_s1 = inlined_call_operand.vmem [shape: f32[1,2048], index: 1, kind: output, shape index: {}]  }
   0x1   :  { %v38_v0 = vld [vmem:[%s100_s0] sm:$0xff]  ;;  %v40_v1 = vld [vmem:[%s100_s0 + $0x8] sm:$0xff] }
   0x2   :  { %39 = vst [vmem:[%s101_s1] sm:$0xff] %v38_v0  ;;  %41 = vst [vmem:[%s101_s1 + $0x8] sm:$0xff] %v40_v1 }
   0x3   :  { %49 = vsyncadd [#allocation2], 256 }
   0x4   :  { %76 = dma.done.wait [#allocation2], 256 }
   0x5   :  { %77 = vsyncadd [#allocation2], 4294967040 }
   0x6   :  { %53 = vsyncmov [#allocation2] }
   0x9   :  { %s54_s14 = vpop.sfrf %53 }
   0xa   :  { %p74_p0 = scmp.ne.s32.totalorder %s54_s14, 0 }
   0xc   :  { %58 = shalt.err (%p74_p0)  }
   0xd   :  { %60 = vsyncmov [#allocation2 + $0x1] }
  0x10   :  { %s61_s15 = vpop.sfrf %60 }
  0x11   :  { %p75_p1 = scmp.ne.s32.totalorder %s61_s15, 0 }
  0x13   :  { %65 = shalt.err (%p75_p1)  }

</bundles_post_ra>
